<compile_context>
chip_gen: v7x
topology: tpu7x:2x2x1
jax: 0.10.0
libtpu: 0.0.40
codegen_flags: <defaults>
</compile_context>

<pallas_src>
import functools

import jax
import jax.numpy as jnp
from jax.experimental import pallas as pl
from jax.experimental.pallas import tpu as pltpu


# ---------------------------------------------------------------------------
# Kernels
# ---------------------------------------------------------------------------

def _se_single_pass_kernel(x_ref, w1_ref, w2_ref, o_ref, *, hw_true):
    """Fused squeeze + excite + scale for a (Nb, C, HWp) block."""
    x = x_ref[...]                                                   # (Nb, C, HWp)

    # Squeeze: global average pool, accumulated in f32 (convert folded into the
    # reduce).  Padded lanes are zero, so dividing by the true HW is exact.
    pooled = jnp.sum(x, axis=-1, dtype=jnp.float32) * (1.0 / hw_true)  # (Nb, C)

    # Excitation: two 1x1 convs == small MXU matmuls, kept lane-dense (C last).
    hidden = jax.lax.dot_general(
        pooled, w1_ref[...].astype(jnp.float32),
        dimension_numbers=(((1,), (1,)), ((), ())),
        preferred_element_type=jnp.float32)                          # (Nb, Cr)
    hidden = jnp.maximum(hidden, 0.0)
    gate = jax.lax.dot_general(
        hidden, w2_ref[...].astype(jnp.float32),
        dimension_numbers=(((1,), (1,)), ((), ())),
        preferred_element_type=jnp.float32)                          # (Nb, C)
    gate = jax.nn.sigmoid(gate)

    # Scale: multiply in the input dtype (bf16 inputs stay bf16 — only the tiny
    # (Nb, C) gate is cast), fused with the store.
    o_ref[...] = x * gate.astype(x.dtype)[:, :, None]


def _se_gate_kernel(x_ref, w1_ref, w2_ref, gate_ref, acc_ref, *, hw_true):
    """Two-pass, pass 1: HW-tiled pooling + excitation producing (1, 1, C) gate."""
    h = pl.program_id(1)

    @pl.when(h == 0)
    def _():
        acc_ref[...] = jnp.zeros_like(acc_ref)

    # Accumulate channel sums in f32 across HW tiles.
    acc_ref[...] += jnp.sum(x_ref[...], axis=-1, dtype=jnp.float32)   # (1, C)

    @pl.when(h == pl.num_programs(1) - 1)
    def _():
        pooled = acc_ref[...] * (1.0 / hw_true)                       # (1, C)
        hidden = jax.lax.dot_general(
            pooled, w1_ref[...].astype(jnp.float32),
            dimension_numbers=(((1,), (1,)), ((), ())),
            preferred_element_type=jnp.float32)
        hidden = jnp.maximum(hidden, 0.0)
        gate = jax.lax.dot_general(
            hidden, w2_ref[...].astype(jnp.float32),
            dimension_numbers=(((1,), (1,)), ((), ())),
            preferred_element_type=jnp.float32)
        gate_ref[...] = jax.nn.sigmoid(gate)[:, None, :].astype(gate_ref.dtype)


def _se_scale_kernel(x_ref, gate_ref, o_ref):
    """Two-pass, pass 2: HW-tiled channel-wise rescale."""
    x = x_ref[...]                                   # (1, C, THW)
    g = gate_ref[...][:, 0, :]                       # (1, C) already in x dtype
    o_ref[...] = x * g.astype(x.dtype)[:, :, None]


# ---------------------------------------------------------------------------
# Wrapper-side sizing helpers
# ---------------------------------------------------------------------------

def _vmem_capacity_bytes():
    """Physical VMEM per TensorCore; conservative (v7x) fallback if unknown."""
    try:
        info = pltpu.get_tpu_info()
        for name in ("vmem_capacity_bytes", "vmem_size_bytes", "vmem_bytes"):
            v = getattr(info, name, None)
            if v:
                return int(v)
    except Exception:
        pass
    return 64 * (1 << 20)


def _pick_single_pass_nb(n, per_sample_bytes, working_budget_bytes):
    """Pick the batch block Nb (a divisor of n), or None if even Nb=1 won't fit.

    Preference order (per measured tile-size / pipelining behavior):
      1. >= 2 grid steps  (megacore sharding on v7x, any overlap at all)
      2. block >= ~2 MiB  (near HBM roofline)
      3. 3-4+ grid steps  (prefetch(i+1) / compute(i) / writeback(i-1) overlap)
      4. block <= ~8 MiB  (bigger buys nothing)
      5. Nb multiple of 8 (sublane-friendly excitation tiles)
    """
    max_nb = working_budget_bytes // (4 * per_sample_bytes)  # 2x-buffered in+out
    if max_nb < 1:
        return None
    divisors = [d for d in range(1, n + 1) if n % d == 0 and d <= max_nb]
    lo, hi = 2 * (1 << 20), 8 * (1 << 20)

    def key(nb):
        steps = n // nb
        blk = nb * per_sample_bytes
        return (steps >= 2, blk >= lo, min(steps, 4), blk <= hi, nb % 8 == 0, blk)

    return max(divisors, key=key)


def _pick_hw_tile(hwp, c, itemsize, working_budget_bytes):
    """Pick an HW tile (multiple of 128 dividing hwp) for the two-pass path."""
    q = hwp // 128
    cands = [t * 128 for t in range(1, q + 1) if q % t == 0]
    fit = [t for t in cands if 4 * c * t * itemsize <= working_budget_bytes]
    if not fit:
        return 128
    hi = 8 * (1 << 20)

    def key(thw):
        blk = c * thw * itemsize
        steps = hwp // thw
        return (steps >= 2, blk <= hi, min(steps, 4), blk)

    return max(fit, key=key)


# ---------------------------------------------------------------------------
# pallas_call wrappers
# ---------------------------------------------------------------------------

def _se_single_pass(x_flat, w1, w2, nb, hw_true, budget, w_bytes):
    N, C, HWp = x_flat.shape
    C_red = w1.shape[0]
    itemsize = jnp.dtype(x_flat.dtype).itemsize

    needed = 4 * nb * C * HWp * itemsize + 2 * w_bytes
    vmem_limit = int(min(budget, max(int(needed * 1.3), 32 * (1 << 20))))

    cost = pl.CostEstimate(
        flops=2 * N * C * hw_true + 4 * N * C * C_red,
        transcendentals=2 * N * C,                      # sigmoid ~ exp + recip
        bytes_accessed=2 * N * C * hw_true * itemsize + w_bytes,
    )

    return pl.pallas_call(
        functools.partial(_se_single_pass_kernel, hw_true=hw_true),
        out_shape=jax.ShapeDtypeStruct((N, C, HWp), x_flat.dtype),
        grid_spec=pltpu.PrefetchScalarGridSpec(
            num_scalar_prefetch=0,
            grid=(N // nb,),
            in_specs=[
                pl.BlockSpec((nb, C, HWp), lambda n: (n, 0, 0)),
                # Constant block index -> weights DMA'd once, not re-fetched.
                pl.BlockSpec((C_red, C), lambda n: (0, 0)),
                pl.BlockSpec((C, C_red), lambda n: (0, 0)),
            ],
            out_specs=pl.BlockSpec((nb, C, HWp), lambda n: (n, 0, 0)),
        ),
        compiler_params=pltpu.CompilerParams(
            dimension_semantics=("parallel",),
            vmem_limit_bytes=vmem_limit,
        ),
        cost_estimate=cost,
    )(x_flat, w1, w2)


def _se_two_pass(x_flat, w1, w2, hw_true, budget, w_bytes):
    """HW-tiled two-pass path for images too large for a single-pass block."""
    N, C, HWp = x_flat.shape
    C_red = w1.shape[0]
    itemsize = jnp.dtype(x_flat.dtype).itemsize

    x_budget = max(budget - 2 * w_bytes - (2 << 20), 1 << 20)
    thw = _pick_hw_tile(HWp, C, itemsize, x_budget)
    n_hw = HWp // thw
    blk_bytes = C * thw * itemsize

    # --- Pass 1: pooling over HW tiles + tiny excitation -> gate (N, 1, C) ---
    gate_vmem = int(min(budget,
                        max(int((2 * blk_bytes + 2 * w_bytes) * 1.3),
                            32 * (1 << 20))))
    gate = pl.pallas_call(
        functools.partial(_se_gate_kernel, hw_true=hw_true),
        out_shape=jax.ShapeDtypeStruct((N, 1, C), x_flat.dtype),
        grid_spec=pltpu.PrefetchScalarGridSpec(
            num_scalar_prefetch=0,
            grid=(N, n_hw),
            in_specs=[
                pl.BlockSpec((1, C, thw), lambda n, h: (n, 0, h)),
                pl.BlockSpec((C_red, C), lambda n, h: (0, 0)),
                pl.BlockSpec((C, C_red), lambda n, h: (0, 0)),
            ],
            out_specs=pl.BlockSpec((1, 1, C), lambda n, h: (n, 0, 0)),
            scratch_shapes=[pltpu.VMEM((1, C), jnp.float32)],
        ),
        compiler_params=pltpu.CompilerParams(
            dimension_semantics=("parallel", "arbitrary"),
            vmem_limit_bytes=gate_vmem,
        ),
        cost_estimate=pl.CostEstimate(
            flops=N * C * hw_true + 4 * N * C * C_red,
            transcendentals=2 * N * C,
            bytes_accessed=N * C * hw_true * itemsize + w_bytes
            + N * C * itemsize,
        ),
    )(x_flat, w1, w2)

    # --- Pass 2: HW-tiled rescale ---
    scale_vmem = int(min(budget,
                         max(int((4 * blk_bytes + 2 * N * C * itemsize) * 1.3),
                             32 * (1 << 20))))
    return pl.pallas_call(
        _se_scale_kernel,
        out_shape=jax.ShapeDtypeStruct((N, C, HWp), x_flat.dtype),
        grid_spec=pltpu.PrefetchScalarGridSpec(
            num_scalar_prefetch=0,
            grid=(N, n_hw),
            in_specs=[
                pl.BlockSpec((1, C, thw), lambda n, h: (n, 0, h)),
                pl.BlockSpec((1, 1, C), lambda n, h: (n, 0, 0)),
            ],
            out_specs=pl.BlockSpec((1, C, thw), lambda n, h: (n, 0, h)),
        ),
        compiler_params=pltpu.CompilerParams(
            dimension_semantics=("parallel", "parallel"),
            vmem_limit_bytes=scale_vmem,
        ),
        cost_estimate=pl.CostEstimate(
            flops=N * C * hw_true,
            transcendentals=0,
            bytes_accessed=2 * N * C * hw_true * itemsize + N * C * itemsize,
        ),
    )(x_flat, gate)


def se_block(x, w1, w2, *, force_two_pass=False):
    """x: (N, C, H, W); w1: (C//r, C); w2: (C, C//r). Returns (N, C, H, W)."""
    N, C, H, W = x.shape
    HW = H * W
    itemsize = jnp.dtype(x.dtype).itemsize

    # Lane-dense spatial axis: pad HW to a multiple of 128 (unmasked stores).
    # Pooling divides by the true HW; the padded tail (zeros) is sliced off.
    HWp = ((HW + 127) // 128) * 128
    x_flat = x.reshape(N, C, HW)
    if HWp != HW:
        x_flat = jnp.pad(x_flat, ((0, 0), (0, 0), (0, HWp - HW)))
        # TODO(synk): for heavily non-aligned HW the wrapper pad/slice costs an
        # extra HBM pass; a lane-repack that keeps x in place would avoid it.

    w_bytes = (w1.size * jnp.dtype(w1.dtype).itemsize
               + w2.size * jnp.dtype(w2.dtype).itemsize)

    # Per-generation VMEM budget (85% of physical; conservative 64 MiB if the
    # query is unavailable) — works on v5e/v6e (128 MiB) and v7x (64 MiB).
    budget = int(_vmem_capacity_bytes() * 0.85)
    x_budget = max(budget - 2 * w_bytes - (2 << 20), 1 << 20)

    per_sample = C * HWp * itemsize
    nb = None if force_two_pass else _pick_single_pass_nb(N, per_sample, x_budget)

    if nb is not None:
        out_flat = _se_single_pass(x_flat, w1, w2, nb, HW, budget, w_bytes)
    else:
        out_flat = _se_two_pass(x_flat, w1, w2, HW, budget, w_bytes)

    if HWp != HW:
        out_flat = out_flat[:, :, :HW]
    return out_flat.reshape(N, C, H, W)


def se_block_ref(x, w1, w2):
    """Pure-JAX reference matching the PyTorch forward."""
    pooled = jnp.mean(x, axis=(2, 3))                      # (N, C)
    hidden = jnp.maximum(pooled @ w1.T, 0.0)               # (N, C_red)
    gate = jax.nn.sigmoid(hidden @ w2.T)                   # (N, C)
    return x * gate[:, :, None, None]


if __name__ == "__main__":
    key = jax.random.PRNGKey(0)
    kx, k1, k2, kx2 = jax.random.split(key, 4)

    # Shapes consistent with the module (channels >= reduction).
    N, C, H, W = 2, 64, 16, 16
    reduction = 16
    C_red = C // reduction

    x = jax.random.normal(kx, (N, C, H, W), dtype=jnp.float32)
    w1 = jax.random.normal(k1, (C_red, C), dtype=jnp.float32) * (1.0 / C) ** 0.5
    w2 = jax.random.normal(k2, (C, C_red), dtype=jnp.float32) * (1.0 / C_red) ** 0.5

    ref = se_block_ref(x, w1, w2)

    # 1) Main path: single-pass fused kernel, lane-aligned HW (256).
    out = se_block(x, w1, w2)
    jax.block_until_ready(out)
    assert out.shape == (N, C, H, W)
    assert jnp.allclose(out, ref, atol=1e-5, rtol=1e-5), "single-pass mismatch"

    # 2) Two-pass HW-tiled fallback (used when one image exceeds the VMEM
    #    budget on real SE stages), forced here at small shapes to verify it.
    out2 = se_block(x, w1, w2, force_two_pass=True)
    jax.block_until_ready(out2)
    assert jnp.allclose(out2, ref, atol=1e-5, rtol=1e-5), "two-pass mismatch"

    # 3) Non-128-multiple spatial size (HW = 49 -> padded to 128 lanes).
    x3 = jax.random.normal(kx2, (N, C, 7, 7), dtype=jnp.float32)
    out3 = se_block(x3, w1, w2)
    jax.block_until_ready(out3)
    ref3 = se_block_ref(x3, w1, w2)
    assert jnp.allclose(out3, ref3, atol=1e-5, rtol=1e-5), "padded-HW mismatch"

    print("KERNEL_OK")
</pallas_src>

<mosaic_0001>
module attributes {stable_mosaic.version = 11 : i64} {
  func.func @_se_single_pass_kernel(%arg0: i32, %arg1: memref<1x64x256xf32, #tpu.memory_space<vmem>>, %arg2: memref<4x64xf32, #tpu.memory_space<vmem>>, %arg3: memref<64x4xf32, #tpu.memory_space<vmem>>, %arg4: memref<1x64x256xf32, #tpu.memory_space<vmem>>) attributes {dimension_semantics = [#tpu.dimension_semantics<parallel>], iteration_bounds = array<i64: 2>, scalar_prefetch = 0 : i64, scratch_operands = 0 : i64, tpu.core_type = #tpu.core_type<tc>, window_params = [{transform_indices = @transform_0, window_bounds = array<i64: 1, 64, 256>}, {pipeline_mode = #tpu.pipeline_mode<synchronous>, transform_indices = @transform_1, window_bounds = array<i64: 4, 64>}, {pipeline_mode = #tpu.pipeline_mode<synchronous>, transform_indices = @transform_2, window_bounds = array<i64: 64, 4>}, {transform_indices = @transform_3, window_bounds = array<i64: 1, 64, 256>}]} {
    %c0 = arith.constant 0 : index
    %c0_0 = arith.constant 0 : index
    %c0_1 = arith.constant 0 : index
    %0 = vector.load %arg1[%c0, %c0_0, %c0_1] : memref<1x64x256xf32, #tpu.memory_space<vmem>>, vector<1x64x256xf32>
    %cst = arith.constant dense<0.000000e+00> : vector<1x64xf32>
    %1 = vector.multi_reduction <add>, %0, %cst [2] : vector<1x64x256xf32> to vector<1x64xf32>
    %cst_2 = arith.constant 3.906250e-03 : f32
    %2 = vector.broadcast %cst_2 : f32 to vector<1x64xf32>
    %3 = arith.mulf %1, %2 : vector<1x64xf32>
    %c0_3 = arith.constant 0 : index
    %c0_4 = arith.constant 0 : index
    %4 = vector.load %arg2[%c0_3, %c0_4] : memref<4x64xf32, #tpu.memory_space<vmem>>, vector<4x64xf32>
    %cst_5 = arith.constant dense<0.000000e+00> : vector<1x4xf32>
    %5 = tpu.matmul %3, %4, %cst_5 {dimension_numbers = #tpu.dot_dimension_numbers<[1], [1], [0], [0], [0, 0, 1, 0], [], []>} : vector<1x64xf32>, vector<4x64xf32>, vector<1x4xf32> -> vector<1x4xf32>
    %cst_6 = arith.constant 0.000000e+00 : f32
    %6 = vector.broadcast %cst_6 : f32 to vector<1x4xf32>
    %7 = arith.maximumf %5, %6 : vector<1x4xf32>
    %c0_7 = arith.constant 0 : index
    %c0_8 = arith.constant 0 : index
    %8 = vector.load %arg3[%c0_7, %c0_8] : memref<64x4xf32, #tpu.memory_space<vmem>>, vector<64x4xf32>
    %cst_9 = arith.constant dense<0.000000e+00> : vector<1x64xf32>
    %9 = tpu.matmul %7, %8, %cst_9 {dimension_numbers = #tpu.dot_dimension_numbers<[1], [1], [0], [0], [0, 0, 1, 0], [], []>} : vector<1x4xf32>, vector<64x4xf32>, vector<1x64xf32> -> vector<1x64xf32>
    %10 = arith.negf %9 : vector<1x64xf32>
    %11 = math.exp %10 : vector<1x64xf32>
    %cst_10 = arith.constant 1.000000e+00 : f32
    %12 = vector.broadcast %cst_10 : f32 to vector<1x64xf32>
    %13 = arith.addf %12, %11 : vector<1x64xf32>
    %14 = arith.divf %12, %13 : vector<1x64xf32>
    %15 = vector.shape_cast %14 : vector<1x64xf32> to vector<1x64x1xf32>
    %16 = vector.broadcast %15 : vector<1x64x1xf32> to vector<1x64x256xf32>
    %17 = arith.mulf %0, %16 : vector<1x64x256xf32>
    %c0_11 = arith.constant 0 : index
    %c0_12 = arith.constant 0 : index
    %c0_13 = arith.constant 0 : index
    %18 = vector.load %arg4[%c0_11, %c0_12, %c0_13] : memref<1x64x256xf32, #tpu.memory_space<vmem>>, vector<1x64x256xf32>
    tpu.vector_store %arg4[%c0_11, %c0_12, %c0_13], %17 {strides = array<i32>} : memref<1x64x256xf32, #tpu.memory_space<vmem>>, vector<1x64x256xf32>,
    return
  }
  func.func @transform_0(%arg0: i32) -> (i32, i32, i32) {
    %c0_i32 = arith.constant 0 : i32
    %c0_i32_0 = arith.constant 0 : i32
    %c0_i32_1 = arith.constant 0 : i32
    return %arg0, %c0_i32, %c0_i32_0 : i32, i32, i32
  }
  func.func @transform_1(%arg0: i32) -> (i32, i32) {
    %c0_i32 = arith.constant 0 : i32
    %c0_i32_0 = arith.constant 0 : i32
    %c0_i32_1 = arith.constant 0 : i32
    return %c0_i32, %c0_i32_0 : i32, i32
  }
  func.func @transform_2(%arg0: i32) -> (i32, i32) {
    %c0_i32 = arith.constant 0 : i32
    %c0_i32_0 = arith.constant 0 : i32
    %c0_i32_1 = arith.constant 0 : i32
    return %c0_i32, %c0_i32_0 : i32, i32
  }
  func.func @transform_3(%arg0: i32) -> (i32, i32, i32) {
    %c0_i32 = arith.constant 0 : i32
    %c0_i32_0 = arith.constant 0 : i32
    %c0_i32_1 = arith.constant 0 : i32
    return %arg0, %c0_i32, %c0_i32_0 : i32, i32, i32
  }
}

</mosaic_0001>

<bundles_post_ra>
// kernel: tpu_custom_call.1
= control target key start
LH: loop header
LB: loop body
LE: loop exit
PB: predicated region body
PF: predicated region fallthrough
CT: control target
= control target key end

     0   :  { %8 = vsyncpa [#allocation3], 0  ;;  %s1212_s0 = inlined_call_operand.hbm [shape: f32[2,64,256], index: 0, kind: input, shape index: {}]   ;;  %s1213_s1 = inlined_call_operand.vmem [shape: f32[4,64], index: 1, kind: input, shape index: {}]   ;;  %s1214_s2 = inlined_call_operand.vmem [shape: f32[64,4], index: 2, kind: input, shape index: {}]   ;;  %s1215_s3 = inlined_call_operand.hbm [shape: f32[2,64,256], index: 3, kind: output, shape index: {}]  }
   0x1   :  { %10 = vsyncpa [#allocation3 + $0x1], 0 }
   0x2   :  { %11 = vsyncpa [#allocation4], 0 }
   0x3   :  { %13 = vsyncpa [#allocation4 + $0x1], 0  ;;  %s907_s12 = smov 0   ;;  %s909_s13 = smov 0  }
   0x4   :  { %s911_s14 = smov 0   ;;  %s913_s15 = smov 0  }
   0x5 LB: > { %s928_s16 = sadd.s32 4294967295, %s876_s15   ;;  %s644_s17 = sadd.s32 4294967294, %s876_s15   ;;  %s876_s15 = sphi %s913_s15, %s1230_s15   ;;  %s872_s14 = sphi %s911_s14, %s1229_s14   ;;  %s868_s13 = sphi %s909_s13, %s1228_s13   ;;  %s864_s12 = sphi %s907_s12, %s1227_s12  }
   0x6   : > { %s932_s18 = sadd.s32 1, %s876_s15   ;;  %s26_s19 = sadd.s32 1, %s872_s14 }
   0x7   : > { %s23_s20 = ssub.s32 %s876_s15, %s932_s18  ;;  %p33_p0 = scmp.ne.s32.totalorder %s872_s14, %s868_s13 }
   0x8   : > { %p24_p1 = scmp.eq.s32.totalorder %s23_s20, 0  ;;  %p34_p2 = scmp.eq.s32.totalorder %s876_s15, 0 }
   0x9   : > { %p39_p3 = scmp.ne.s32.totalorder %s868_s13, %s864_s12  ;;  %p40_p4 = scmp.eq.s32.totalorder %s928_s16, 0 }
   0xa   : > { %s944_s21 = scalar_select %p24_p1, %s872_s14, %s26_s19  }
   0xb   : > { %p946_p5 = por %p34_p2, %p33_p0  ;;  %p950_p6 = por %p40_p4, %p39_p3 }
   0xc   : > { %p105_p7 = scmp.eq.s32.totalorder %s928_s16, 1  ;;  %p111_p8 = scmp.eq.s32.totalorder %s644_s17, 1 }
   0xd   : > { %p735_p10 = scmp.lt.s32.totalorder %s876_s15, 2  ;;  %s137_s26 = sand.u32 1, %s872_s14  }
   0xe   : > { %p957_p11 = por %p105_p7, %p33_p0  ;;  %p961_p12 = por %p111_p8, %p39_p3 }
   0xf   : > { %s670_s27 = sshll.u32 %s876_s15, 11  ;;  %s647_s28 = sshll.u32 %s137_s26, 7 }
  0x10   : > { %s1219_s24 = scalar_select %p957_p11, 1, 0 }
  0x11   : > { %s1220_s25 = scalar_select %p961_p12, 1, 0 }
  0x12   : > { %s970_s4 = scalar_lea.hbm %s1212_s0, %s670_s27  ;;  %s141_s5 = scalar_lea.vmem [#allocation2], %s647_s28 }
  0x13   : > { %s148_s6 = sshll.u32 %s141_s5, 4  ;;  %p974_p13 = pnand %p735_p10, %p946_p5  ;;  %s978_s6 = int_to_ptr.vmem [resolvable:$true] %s148_s6 }
  0x14   : > { %s980_s8 = scalar_lea.sflag [#allocation3], %s137_s26  ;;  %s780_s9 = scalar_lea.hbm %s970_s4, 2048 }
  0x15   : > { %p781_p0 = scmp.ne.s32.totalorder %s970_s4, %s780_s9  ;;  %p782_p1 = pneg %p974_p13 }
  0x16   : > { %s785_s17 = scalar_lea.hbm %s1212_s0, 4096  ;;  %p786_p4 = scmp.lt.u32.totalorder %s970_s4, %s1212_s0 }
  0x17   : > { %p783_p2 = pnand %p782_p1, %p781_p0  ;;  %p787_p5 = scmp.lt.u32.totalorder %s785_s17, %s780_s9 }
  0x18   : > { %p789_p8 = scmp.lt.u32.totalorder %s780_s9, %s970_s4 }
  0x19   : > { %p784_p3 = pneg %p783_p2  ;;  %p788_p7 = por %p787_p5, %p786_p4 }
  0x1b   : > { %p790_p10 = por %p789_p8, %p788_p7 }
  0x1d   : > { %p791_p9 = pnand %p790_p10, %p784_p3 }
  0x1f   : > { %794 = shalt.err (!%p791_p9)
}
  0x20   : > { %s795_s22 = scalar_lea.vmem %s978_s6, 2048  ;;  %s878_s26 = smov [#allocation2]  }
  0x21   : > { %p796_p0 = scmp.ne.s32.totalorder %s978_s6, %s795_s22  ;;  %s800_s27 = sshll.u32 %s878_s26, 4  ;;  %s801_s27 = int_to_ptr.vmem [resolvable:$false] %s800_s27 }
  0x22   : > { %s802_s28 = scalar_lea.vmem %s801_s27, 4096  ;;  %p803_p11 = scmp.lt.s32.totalorder %s978_s6, %s801_s27 }
  0x23   : > { %p798_p2 = pnand %p796_p0, %p782_p1  ;;  %p804_p4 = scmp.lt.s32.totalorder %s802_s28, %s795_s22 }
  0x25   : > { %p799_p12 = pneg %p798_p2  ;;  %p805_p5 = por %p804_p4, %p803_p11 }
  0x27   : > { %p806_p7 = pnand %p805_p5, %p799_p12 }
  0x29   : > { %809 = shalt.err (!%p806_p7)
}
  0x2a   : > { %s879_s29 = smov 256   ;;  %s880_s30 = smov 16  }
  0x2b   : > { %730 = dma.hbm_to_vmem [thread:$0]  (!%p974_p13), %s970_s4, 2048, %s978_s6, %s980_s8, %s879_s29, %s879_s29, %s880_s30  }
  0x2c   : > { %p650_p9 = scmp.ge.s32.totalorder %s876_s15, 1  ;;  %p156_p1 = scmp.lt.s32.totalorder %s876_s15, 3 }
  0x2e   : > { %p157_p3 = pnand %p650_p9, %p156_p1 }
  0x2f   : > { %s1011_s5 = sand.u32 (!%p157_p3), 1, %s868_s13  }
  0x30   : > { %160 = sbr.rel (%p157_p3) target bundleno = 821 (0x335), region = 32  ;;  %s651_s9 = sshll.u32 (!%p157_p3), %s1011_s5, 7 }
  0x31   : > { %s163_s10 = scalar_lea.sflag (!%p157_p3), [#allocation3], %s1011_s5  ;;  %s166_s11 = scalar_lea.vmem (!%p157_p3), [#allocation2], %s651_s9 }
  0x37   : > { %855 = dma.done.wait (%p950_p6), %s163_s10, 2048  }
  0x38   : > { %857 = vsyncadd (%p950_p6), %s163_s10, 4294965248  ;;  %v1021_v0 = vld [vmem:[%s166_s11] sm:$0xff]  ;;  %v1023_v1 = vld [vmem:[%s166_s11 + $0x8] sm:$0xff]  ;;  %v881_v24 = vmov 0.0   ;;  %vm301_vm0 = vcmask 523264   ;;  %vm882_vm1 = vmmov 0   ;;  %v246_v40 = vlaneseq }
  0x39   : > { %v1025_v2 = vld [vmem:[%s166_s11 + $0x20] sm:$0xff]  ;;  %v205_v3 = vadd.f32 %v1023_v1, %v1021_v0  ;;  %v1029_v4 = vld [vmem:[%s166_s11 + $0x28] sm:$0xff]  ;;  %v1031_v5 = vld [vmem:[%s166_s11 + $0x10] sm:$0xff]  ;;  %683 = vmatprep.subr.mxu0 %v881_v24  ;;  %685 = vmatprep.mubr.msk.f32.mxu0 %vm882_vm1, %v881_v24  ;;  %vm386_vm2 = vcmask 31744   ;;  %v883_v28 = vmov 0.0|0.0   ;;  %vm257_vm4 = vcmask 130112  }
  0x3a   : > { %v1033_v6 = vld [vmem:[%s166_s11 + $0x18] sm:$0xff]  ;;  %v211_v7 = vadd.f32 %v1029_v4, %v1025_v2  ;;  %v1037_v8 = vld [vmem:[%s166_s11 + $0x30] sm:$0xff]  ;;  %v1045_v12 = vld [vmem:[%s166_s11 + $0x40] sm:$0xff]  ;;  %704 = vmatprep.mubr.msk.f32.mxu1 %vm882_vm1, %v881_v24  ;;  %707 = vmatprep.subr.bf16.mxu1 %v883_v28  ;;  %v247_v41 = vand.u32 127, %v246_v40  ;;  %v1111_v42 = vshrl.u32 %v246_v40, 7  ;;  %vm264_vm5 = vcmask 195712  }
  0x3b   : > { %v1039_v9 = vld [vmem:[%s166_s11 + $0x38] sm:$0xff]  ;;  %206 = vadd.xlane.f32.xlu0 %v205_v3  ;;  %v208_v10 = vadd.f32 %v1033_v6, %v1031_v5  ;;  %v1047_v13 = vld [vmem:[%s166_s11 + $0x48] sm:$0xff]  ;;  %v1049_v14 = vld [vmem:[%s166_s11 + $0x50] sm:$0xff]  ;;  %vm271_vm6 = vcmask 261312   ;;  %vm278_vm7 = vcmask 326912   ;;  %vm285_vm8 = vcmask 392512  }
  0x3c   : > { %212 = vadd.xlane.f32.xlu1 %v211_v7  ;;  %v214_v11 = vadd.f32 %v1039_v9, %v1037_v8  ;;  %v1051_v15 = vld [vmem:[%s166_s11 + $0x58] sm:$0xff]  ;;  %v217_v16 = vadd.f32 %v1047_v13, %v1045_v12  ;;  %v1057_v18 = vld [vmem:[%s166_s11 + $0x60] sm:$0xff]  ;;  %v1059_v19 = vld [vmem:[%s166_s11 + $0x68] sm:$0xff]  ;;  %v252_v43 = vadd.s32 4294967288, %v247_v41  ;;  %v259_v45 = vadd.s32 4294967280, %v247_v41  ;;  %s1131_s6 = scalar_lea.vmem [#allocation5], %s651_s9 }
  0x3d   : > { %v220_v17 = vadd.f32 %v1051_v15, %v1049_v14  ;;  %v1061_v20 = vld [vmem:[%s166_s11 + $0x70] sm:$0xff]  ;;  %v1063_v21 = vld [vmem:[%s166_s11 + $0x78] sm:$0xff]  ;;  %v223_v22 = vadd.f32 %v1059_v19, %v1057_v18  ;;  %v237_v25 = vld [vmem:[%s1213_s1] sm:$0xf]  ;;  %v266_v46 = vadd.s32 4294967272, %v247_v41  ;;  %v250_v48 = vsub.s32 %v247_v41, %v1111_v42  ;;  %s671_s9 = sshll.u32 %s928_s16, 11 }
  0x3e   : > { %v226_v23 = vadd.f32 %v1063_v21, %v1061_v20  ;;  %684 = vmatpush3.xpose.msk.msra.mxu0 %vm301_vm0, %v237_v25  ;;  %v378_v26 = vld [vmem:[%s1214_s2] sm:$0xff]  ;;  %v379_v27 = vld [vmem:[%s1214_s2 + $0x8] sm:$0xff]  ;;  %vm1081_vm3 = vmpackc.low %vm386_vm2, %vm386_vm2  ;;  %v255_v50 = vsub.s32 %v252_v43, %v1111_v42  ;;  %v273_v51 = vadd.s32 4294967264, %v247_v41  ;;  %v262_v52 = vsub.s32 %v259_v45, %v1111_v42  ;;  %s571_s7 = sshll.u32 %s1131_s6, 4  ;;  %s1162_s19 = scalar_lea.hbm %s1215_s3, %s671_s9  ;;  %s1164_s7 = int_to_ptr.vmem [resolvable:$true] %s571_s7 }
  0x3f   : > { %209 = vadd.xlane.f32.xlu0 %v208_v10  ;;  %v708_v29 = vpack.c.bf16 %v379_v27, %v378_v26  ;;  %v380_v31 = vld [vmem:[%s1214_s2 + $0x10] sm:$0xff]  ;;  %v381_v32 = vld [vmem:[%s1214_s2 + $0x18] sm:$0xff]  ;;  %v382_v34 = vld [vmem:[%s1214_s2 + $0x20] sm:$0xff]  ;;  %v269_v55 = vsub.s32 %v266_v46, %v1111_v42  ;;  %v280_v56 = vadd.s32 4294967256, %v247_v41  ;;  %v287_v63 = vadd.s32 4294967248, %v247_v41  ;;  %s558_s16 = scalar_lea.sflag [#allocation4], %s1011_s5 }
  0x40   : > { %215 = vadd.xlane.f32.xlu1 %v214_v11  ;;  %v712_v33 = vpack.c.bf16 %v381_v32, %v380_v31  ;;  %v383_v35 = vld [vmem:[%s1214_s2 + $0x28] sm:$0xff]  ;;  %v384_v37 = vld [vmem:[%s1214_s2 + $0x30] sm:$0xff]  ;;  %v385_v38 = vld [vmem:[%s1214_s2 + $0x38] sm:$0xff]  ;;  %v276_v62 = vsub.s32 %v273_v51, %v1111_v42  ;;  %vm292_vm9 = vcmask 458112   ;;  %vm299_vm10 = vcmask 523712   ;;  %s810_s20 = scalar_lea.vmem %s1164_s7, 2048 }
  0x41   : > { %710 = vmatpush3.bf16.xpose.msk.msra.mxu1 %vm1081_vm3, %v708_v29  ;;  %v716_v36 = vpack.c.bf16 %v383_v35, %v382_v34  ;;  %v720_v39 = vpack.c.bf16 %v385_v38, %v384_v37  ;;  %v283_v11 = vsub.s32 %v280_v56, %v1111_v42  ;;  %p811_p6 = scmp.ne.s32.totalorder %s1164_s7, %s810_s20  ;;  %p1224_p11 = scmp.ne.s32.totalorder %s1219_s24, 0 }
  0x42   : > { %711 = vmatprep.subr.bf16.mxu1 %v883_v28  ;;  %s884_s22 = smov [#allocation5]  }
  0x43   : > { %218 = vadd.xlane.f32.xlu0 %v217_v16  ;;  %v294_v16 = vadd.s32 4294967240, %v247_v41  ;;  %p812_p12 = pnand %p811_p6, %p1224_p11  ;;  %s814_s26 = sshll.u32 %s884_s22, 4  ;;  %s815_s26 = int_to_ptr.vmem [resolvable:$false] %s814_s26 }
  0x44   : > { %221 = vadd.xlane.f32.xlu1 %v220_v17  ;;  %s816_s27 = scalar_lea.vmem %s815_s26, 4096  ;;  %p817_p8 = scmp.lt.s32.totalorder %s1164_s7, %s815_s26 }
  0x45   : > { %v297_v31 = vsub.s32 %v294_v16, %v1111_v42  ;;  %p813_p13 = pneg %p812_p12  ;;  %p818_p10 = scmp.lt.s32.totalorder %s816_s27, %s810_s20 }
  0x47   : > { %224 = vadd.xlane.f32.xlu0 %v223_v22  ;;  %p819_p0 = por %p818_p10, %p817_p8 }
  0x48   : > { %227 = vadd.xlane.f32.xlu1 %v226_v23 }
  0x49   : > { %714 = vmatpush3.bf16.xpose.msk.msra.mxu1 %vm1081_vm3, %v712_v33  ;;  %p820_p2 = pnand %p819_p0, %p813_p13 }
  0x4a   : > { %715 = vmatprep.subr.bf16.mxu1 %v883_v28 }
  0x51   : > { %718 = vmatpush3.bf16.xpose.msk.msra.mxu1 %vm1081_vm3, %v716_v36 }
  0x52   : > { %719 = vmatprep.subr.bf16.mxu1 %v883_v28  ;;  %v290_v28 = vsub.s32 %v287_v63, %v1111_v42 }
  0x59   : > { %722 = vmatpush3.bf16.xpose.msk.msra.mxu1 %vm1081_vm3, %v720_v39 }
  0xc8   : > { %v207_v44 = vpop.xlane.xlu0 %206 }
  0xc9   : > { %v213_v47 = vpop.xlane.xlu1 %212  ;;  %v229_v49 = vmul.f32 0.00390625, %v207_v44 }
  0xca   : > { %v231_v53 = vmul.f32 0.00390625, %v213_v47 }
  0xcb   : > { %v251_v60 = vrot.slane %v229_v49, %v250_v48 }
  0xcc   : > { %v210_v54 = vpop.xlane.xlu0 %209  ;;  %v263_v3 = vrot.slane %v231_v53, %v262_v52 }
  0xcd   : > { %v230_v57 = vmul.f32 0.00390625, %v210_v54  ;;  %v216_v58 = vpop.xlane.xlu1 %215 }
  0xce   : > { %v232_v59 = vmul.f32 0.00390625, %v216_v58 }
  0xcf   : > { %v256_v61 = vrot.slane %v230_v57, %v255_v50  ;;  %v492_v50 = vsub.s32 0, %v1111_v42 }
  0xd0   : > { %v270_v7 = vrot.slane %v232_v59, %v269_v55  ;;  %v219_v10 = vpop.xlane.xlu0 %218 }
  0xd1   : > { %v258_v17 = vsel %vm257_vm4, %v256_v61, %v251_v60  ;;  %v233_v22 = vmul.f32 0.00390625, %v219_v10  ;;  %v222_v23 = vpop.xlane.xlu1 %221 }
  0xd2   : > { %v265_v24 = vsel %vm264_vm5, %v263_v3, %v258_v17  ;;  %v234_v25 = vmul.f32 0.00390625, %v222_v23 }
  0xd3   : > { %v272_v26 = vsel %vm271_vm6, %v270_v7, %v265_v24  ;;  %v277_v27 = vrot.slane %v233_v22, %v276_v62 }
  0xd4   : > { %v284_v29 = vrot.slane %v234_v25, %v283_v11  ;;  %v225_v30 = vpop.xlane.xlu0 %224 }
  0xd5   : > { %v279_v32 = vsel %vm278_vm7, %v277_v27, %v272_v26  ;;  %v235_v33 = vmul.f32 0.00390625, %v225_v30  ;;  %v228_v34 = vpop.xlane.xlu1 %227 }
  0xd6   : > { %v236_v35 = vmul.f32 0.00390625, %v228_v34  ;;  %v286_v37 = vsel %vm285_vm8, %v284_v29, %v279_v32 }
  0xd7   : > { %v291_v36 = vrot.slane %v235_v33, %v290_v28 }
  0xd8   : > { %v298_v38 = vrot.slane %v236_v35, %v297_v31 }
  0xd9   : > { %v293_v39 = vsel %vm292_vm9, %v291_v36, %v286_v37 }
  0xda   : > { %v300_v40 = vsel %vm299_vm10, %v298_v38, %v293_v39 }
  0xdb   : > { %686 = vmatmul.mubr.msk.f32.vlgmr.msra.gmra.mrb[0].mxu0 %vm301_vm0, %v300_v40 }
 0x1ae   : > { %v373_v41 = vpop.f32.mrb[0].mxu0 }
 0x1af   : > { %v377_v43 = vmax.f32 %v373_v41, 0.0  ;;  %v687_v44 = vpop.f32.mrb[1].mxu0 }
 0x1b1   : > { %705 = vmatmul.mubr.msk.f32.vlgmr.msra.gmra.mrb[0].mxu1 %vm386_vm2, %v377_v43 }
 0x284   : > { %v480_v45 = vpop.f32.mrb[0].mxu1 }
 0x285   : > { %v664_v46 = vmul.f32 -1.442695, %v480_v45  ;;  %v706_v47 = vpop.f32.mrb[1].mxu1 }
 0x287   : > { %776 = vpow2.f32 %v664_v46 }
 0x291   : > { %v777_v48 = vpop.eup %776 }
 0x292   : > { %v487_v49 = vadd.f32 1.0, %v777_v48 }
 0x294   : > { %778 = vrcp.f32 %v487_v49 }
 0x29e   : > { %v779_v51 = vpop.eup %778 }
 0x29f   : > { %v493_v52 = vrot.slane %v779_v51, %v492_v50 }
 0x2a1   : > { %499 = vbcast.lane.b32.xlu1 %v493_v52, 264  ;;  %495 = vbcast.lane.b32.xlu0 %v493_v52, 256 }
 0x2a5   : > { %503 = vbcast.lane.b32.xlu1 %v493_v52, 272  ;;  %511 = vbcast.lane.b32.xlu0 %v493_v52, 288 }
 0x2a9   : > { %507 = vbcast.lane.b32.xlu1 %v493_v52, 280  ;;  %519 = vbcast.lane.b32.xlu0 %v493_v52, 304 }
 0x2ad   : > { %515 = vbcast.lane.b32.xlu1 %v493_v52, 296 }
 0x2b1   : > { %523 = vbcast.lane.b32.xlu1 %v493_v52, 312 }
 0x313   : > { %v500_v53 = vpop.permute.xlu1 %499  ;;  %v496_v54 = vpop.permute.xlu0 %495 }
 0x314   : > { %v527_v55 = vmul.f32 %v500_v53, %v1031_v5  ;;  %v528_v56 = vmul.f32 %v500_v53, %v1033_v6  ;;  %v525_v57 = vmul.f32 %v496_v54, %v1021_v0  ;;  %v526_v42 = vmul.f32 %v496_v54, %v1023_v1 }
 0x316   : > { %543 = vst [vmem:[%s1131_s6 + $0x10] sm:$0xff] %v527_v55  ;;  %544 = vst [vmem:[%s1131_s6 + $0x18] sm:$0xff] %v528_v56 }
 0x317   : > { %541 = vst [vmem:[%s1131_s6] sm:$0xff] %v525_v57  ;;  %542 = vst [vmem:[%s1131_s6 + $0x8] sm:$0xff] %v526_v42  ;;  %v504_v5 = vpop.permute.xlu1 %503  ;;  %v512_v0 = vpop.permute.xlu0 %511 }
 0x318   : > { %v529_v1 = vmul.f32 %v504_v5, %v1025_v2  ;;  %v530_v6 = vmul.f32 %v504_v5, %v1029_v4  ;;  %v533_v58 = vmul.f32 %v512_v0, %v1045_v12  ;;  %v534_v59 = vmul.f32 %v512_v0, %v1047_v13 }
 0x31a   : > { %545 = vst [vmem:[%s1131_s6 + $0x20] sm:$0xff] %v529_v1  ;;  %546 = vst [vmem:[%s1131_s6 + $0x28] sm:$0xff] %v530_v6 }
 0x31b   : > { %549 = vst [vmem:[%s1131_s6 + $0x40] sm:$0xff] %v533_v58  ;;  %550 = vst [vmem:[%s1131_s6 + $0x48] sm:$0xff] %v534_v59  ;;  %v508_v60 = vpop.permute.xlu1 %507  ;;  %v520_v61 = vpop.permute.xlu0 %519 }
 0x31c   : > { %v531_v2 = vmul.f32 %v508_v60, %v1037_v8  ;;  %v532_v62 = vmul.f32 %v508_v60, %v1039_v9  ;;  %v537_v4 = vmul.f32 %v520_v61, %v1057_v18  ;;  %v538_v12 = vmul.f32 %v520_v61, %v1059_v19 }
 0x31e   : > { %547 = vst [vmem:[%s1131_s6 + $0x30] sm:$0xff] %v531_v2  ;;  %548 = vst [vmem:[%s1131_s6 + $0x38] sm:$0xff] %v532_v62 }
 0x31f   : > { %553 = vst [vmem:[%s1131_s6 + $0x60] sm:$0xff] %v537_v4  ;;  %554 = vst [vmem:[%s1131_s6 + $0x68] sm:$0xff] %v538_v12  ;;  %v516_v13 = vpop.permute.xlu1 %515 }
 0x320   : > { %v535_v63 = vmul.f32 %v516_v13, %v1049_v14  ;;  %v536_v3 = vmul.f32 %v516_v13, %v1051_v15 }
 0x322   : > { %551 = vst [vmem:[%s1131_s6 + $0x50] sm:$0xff] %v535_v63  ;;  %552 = vst [vmem:[%s1131_s6 + $0x58] sm:$0xff] %v536_v3 }
 0x323   : > { %v524_v8 = vpop.permute.xlu1 %523 }
 0x324   : > { %v539_v9 = vmul.f32 %v524_v8, %v1061_v20  ;;  %v540_v14 = vmul.f32 %v524_v8, %v1063_v21 }
 0x326   : > { %555 = vst [vmem:[%s1131_s6 + $0x70] sm:$0xff] %v539_v9  ;;  %556 = vst [vmem:[%s1131_s6 + $0x78] sm:$0xff] %v540_v14 }
 0x327   : > { %823 = shalt.err (!%p820_p2)
}
 0x328   : > { %s824_s28 = scalar_lea.hbm %s1162_s19, 2048  ;;  %s828_s10 = scalar_lea.hbm %s1215_s3, 4096 }
 0x329   : > { %p825_p4 = scmp.ne.s32.totalorder %s1162_s19, %s824_s28  ;;  %p829_p9 = scmp.lt.u32.totalorder %s1162_s19, %s1215_s3 }
 0x32a   : > { %p830_p1 = scmp.lt.u32.totalorder %s828_s10, %s824_s28  ;;  %p832_p6 = scmp.lt.u32.totalorder %s824_s28, %s1162_s19 }
 0x32b   : > { %p826_p5 = pnand %p825_p4, %p1224_p11 }
 0x32c   : > { %p831_p3 = por %p830_p1, %p829_p9 }
 0x32d   : > { %p827_p7 = pneg %p826_p5 }
 0x32e   : > { %p833_p12 = por %p832_p6, %p831_p3 }
 0x330   : > { %p834_p13 = pnand %p833_p12, %p827_p7 }
 0x332   : > { %837 = shalt.err (!%p834_p13)
}
 0x333   : > { %s885_s4 = smov 256   ;;  %s886_s6 = smov 16  }
 0x334   : > { %725 = dma.vmem_to_hbm [thread:$0]  (%p1224_p11), %s1164_s7, 2048, %s1162_s19, %s558_s16, %s885_s4, %s885_s4, %s886_s6  }
 0x335 PF: > { %s586_s9 = sand.u32 1, %s864_s12   ;;  %p1225_p8 = scmp.ne.s32.totalorder %s1220_s25, 0 }
 0x336   : > { %p1226_p10 = scmp.ge.s32.totalorder %s876_s15, 2  ;;  %s587_s8 = scalar_lea.sflag [#allocation4], %s586_s9 }
 0x338   : > { %p732_p0 = pnand %p1226_p10, %p1225_p8 }
 0x33a   : > { %859 = dma.done.wait (!%p732_p0), %s587_s8, 2048  }
 0x33b   : > { %861 = vsyncadd (!%p732_p0), %s587_s8, 4294965248  ;;  %p16_p2 = scmp.ge.s32.totalorder %s932_s18, 4   ;;  %s1227_s12 = smov %s868_s13 }
 0x33c   : > { %s1228_s13 = smov %s872_s14  ;;  %s1229_s14 = smov %s944_s21 }
 0x33d   : > { %s1230_s15 = smov %s932_s18  ;;  %18 = sbr.rel (!%p16_p2) target bundleno = 5 (0x5), region = 77 }
 0x344   :  { %592 = vsyncpa [#allocation3], 1 }
 0x345   :  { %594 = vsyncpa [#allocation3 + $0x1], 1 }
 0x346   :  { %595 = vsyncpa [#allocation4], 1 }
 0x347   :  { %597 = vsyncpa [#allocation4 + $0x1], 1 }

</bundles_post_ra>
